<compile_context>
chip_gen: v5e
topology: v5e:2x2
jax: 0.10.0
libtpu: 0.0.40
codegen_flags: <defaults>
</compile_context>

<pallas_src>
import jax
import jax.numpy as jnp
from jax import lax
from jax.experimental import pallas as pl
from jax.experimental.pallas import tpu as pltpu


# ----------------------------------------------------------------------------- helpers
def _round_up(x: int, m: int) -> int:
    return ((x + m - 1) // m) * m


def _pick_row_tile(n: int, max_t: int = 512) -> int:
    for t in (512, 256, 128, 64, 32, 16, 8):
        if t <= max_t and n % t == 0:
            return t
    return n


# ----------------------------------------------------------------------------- row L2-normalize kernel
def _l2_normalize_rows(x, *, eps: float = 1e-8, block_rows: int = 512):
    """Row-wise x / max(||x||, eps), computed as x * rsqrt(max(||x||^2, eps^2))."""
    n, d = x.shape
    tn = _pick_row_tile(n, block_rows)
    eps2 = float(eps) * float(eps)

    def kernel(x_ref, o_ref):
        v = x_ref[...].astype(jnp.float32)
        inv = lax.rsqrt(jnp.maximum(jnp.sum(v * v, axis=-1, keepdims=True), eps2))
        o_ref[...] = v * inv

    return pl.pallas_call(
        kernel,
        out_shape=jax.ShapeDtypeStruct((n, d), jnp.float32),
        grid_spec=pltpu.PrefetchScalarGridSpec(
            num_scalar_prefetch=0,
            grid=(n // tn,),
            in_specs=[pl.BlockSpec((tn, d), lambda i: (i, 0))],
            out_specs=pl.BlockSpec((tn, d), lambda i: (i, 0)),
        ),
        compiler_params=pltpu.CompilerParams(dimension_semantics=("parallel",)),
    )(x)


# ----------------------------------------------------------------------------- fused loss kernel
def _make_loss_kernel(B: int, tb: int, tm: int, m_actual: int, m_pad: int,
                      temperature: float):
    inv_temp = 1.0 / float(temperature)
    need_mask = m_pad != m_actual  # static: mask padded memory columns

    def kernel(qn_ref, lab_col_ref, lab_row_ref, memT_ref, mem_lab_ref,
               out_ref, acc_exp, acc_tl, acc_t):
        i = pl.program_id(0)          # batch tile   (parallel)
        k = pl.program_id(1)          # memory tile  (reduction, arbitrary, last)
        nk = pl.num_programs(1)

        row0 = pl.multiple_of(i * tb, tb)
        q_blk = qn_ref[pl.ds(row0, tb), :]          # [tb, D]   normalized queries
        lab_blk = lab_col_ref[pl.ds(row0, tb), :]   # [tb, 1]   int32 labels

        # ---- in-batch ("source") block + accumulator init: once per batch tile
        @pl.when(k == 0)
        def _():
            src = lax.dot_general(q_blk, qn_ref[...], (((1,), (1,)), ((), ())),
                                  preferred_element_type=jnp.float32) * inv_temp
            s_max = jnp.max(src, axis=1, keepdims=True)      # row-max shift (ref)
            s_logits = src - s_max                           # [tb, B]
            rows = row0 + lax.broadcasted_iota(jnp.int32, (tb, B), 0)
            cols = lax.broadcasted_iota(jnp.int32, (tb, B), 1)
            diag = (rows != cols).astype(jnp.float32)        # mask self-contrast
            s_tgt = (lab_blk == lab_row_ref[...]).astype(jnp.float32) * diag
            s_exp = jnp.exp(s_logits) * diag
            acc_exp[...] = jnp.sum(s_exp, axis=1, keepdims=True)
            acc_tl[...] = jnp.sum(s_tgt * s_logits, axis=1, keepdims=True)
            acc_t[...] = jnp.sum(s_tgt, axis=1, keepdims=True)

        # ---- streamed memory-bank tile: [tb, D] @ [D, tm]  (no RHS transpose)
        m_logits = lax.dot_general(q_blk, memT_ref[...], (((1,), (0,)), ((), ())),
                                   preferred_element_type=jnp.float32) * inv_temp
        m_tgt = (lab_blk == mem_lab_ref[...]).astype(jnp.float32)    # [tb, tm]
        m_exp = jnp.exp(m_logits)                  # memory logits are NOT max-shifted (ref)
        if need_mask:
            cols = k * tm + lax.broadcasted_iota(jnp.int32, (tb, tm), 1)
            valid = (cols < m_actual).astype(jnp.float32)
            m_exp = m_exp * valid
            m_tgt = m_tgt * valid
        acc_exp[...] += jnp.sum(m_exp, axis=1, keepdims=True)
        acc_tl[...] += jnp.sum(m_tgt * m_logits, axis=1, keepdims=True)
        acc_t[...] += jnp.sum(m_tgt, axis=1, keepdims=True)

        # ---- finalize: per-row mean log-prob of positives
        @pl.when(k == nk - 1)
        def _():
            log_denom = jnp.log(acc_exp[...])
            # NOTE: assumes every row has >= 1 positive; the PyTorch reference
            # likewise produces NaN when targets.sum(1) == 0.
            out_ref[...] = (acc_tl[...] - log_denom * acc_t[...]) / acc_t[...]

    return kernel


def crossmoco_loss(q, labels, memory, memory_labels, temperature,
                   *, block_m: int = 512, block_b: int = 128, eps: float = 1e-8):
    """CrossMoCo.forward(q, labels) against a given memory bank (one adapt_to branch)."""
    B, D = q.shape
    M, D2 = memory.shape
    assert D == D2, "feature dims must match"

    # --- one-time normalization (Pallas) + feature-major bank layout -----------
    qn = _l2_normalize_rows(q, eps=eps)                                  # [B, D] f32
    mn_t = jnp.swapaxes(_l2_normalize_rows(memory, eps=eps), 0, 1)       # [D, M] f32

    # --- memory-bank tiling (lane-aligned; padded tail masked in-kernel) -------
    tm = min(block_m, _round_up(M, 128))
    m_pad = _round_up(M, tm)
    if m_pad != M:
        mn_t = jnp.pad(mn_t, ((0, 0), (0, m_pad - M)))
    mem_lab = memory_labels.reshape(1, M).astype(jnp.int32)
    if m_pad != M:
        mem_lab = jnp.pad(mem_lab, ((0, 0), (0, m_pad - M)), constant_values=-1)

    # --- batch tiling: multiple of 8 that divides B, else the whole batch ------
    tb = B
    if B % 8 == 0:
        tb = max(8, (min(block_b, B) // 8) * 8)
        while B % tb:
            tb -= 8
    nb = B // tb
    nk = m_pad // tm

    lab_col = labels.reshape(B, 1).astype(jnp.int32)
    lab_row = labels.reshape(1, B).astype(jnp.int32)

    # --- explicit VMEM budget (double-buffered streamed tiles + residents) -----
    need = 4 * (2 * (D * tm + tm)        # memory tile + its labels (double-buffered)
                + 2 * (B * D + 2 * B)    # resident qn + label vectors
                + 2 * tb                 # output block
                + 3 * 8 * 128)           # scratch accumulators (padded)
    vmem_limit = int(min(max(2 * need + (8 << 20), 32 << 20), 64 << 20))

    kernel = _make_loss_kernel(B, tb, tm, M, m_pad, float(temperature))
    per_row = pl.pallas_call(
        kernel,
        out_shape=jax.ShapeDtypeStruct((B, 1), jnp.float32),
        grid_spec=pltpu.PrefetchScalarGridSpec(
            num_scalar_prefetch=0,
            grid=(nb, nk),
            in_specs=[
                pl.BlockSpec((B, D), lambda i, k: (0, 0)),      # qn (resident)
                pl.BlockSpec((B, 1), lambda i, k: (0, 0)),      # labels column
                pl.BlockSpec((1, B), lambda i, k: (0, 0)),      # labels row
                pl.BlockSpec((D, tm), lambda i, k: (0, k)),     # bank, feature-major, streamed
                pl.BlockSpec((1, tm), lambda i, k: (0, k)),     # bank labels, streamed
            ],
            out_specs=pl.BlockSpec((tb, 1), lambda i, k: (i, 0)),
            scratch_shapes=[pltpu.VMEM((tb, 1), jnp.float32)] * 3,
        ),
        compiler_params=pltpu.CompilerParams(
            dimension_semantics=("parallel", "arbitrary"),
            vmem_limit_bytes=vmem_limit,
        ),
    )(qn, lab_col, lab_row, mn_t, mem_lab)

    return -jnp.mean(per_row)


# ----------------------------------------------------------------------------- module-level wrapper
class CrossMoCoJax:
    """Minimal functional mirror of CrossMoCo.forward (both memory banks)."""

    def __init__(self, fin_memory, fin_labels, pro_memory, pro_labels, temperature,
                 *, block_m: int = 512, block_b: int = 128):
        self.fin_memory = fin_memory
        self.fin_labels = fin_labels
        self.pro_memory = pro_memory
        self.pro_labels = pro_labels
        self.temperature = float(temperature)
        self.block_m = block_m
        self.block_b = block_b

    def forward(self, q, labels, adapt_to: str = "prototype"):
        if adapt_to == "prototype":
            mem, mem_lab = self.pro_memory, self.pro_labels
        elif adapt_to == "finance":
            mem, mem_lab = self.fin_memory, self.fin_labels
        else:
            raise ValueError("only have prototype and finance memory")
        return crossmoco_loss(q, labels, mem, mem_lab, self.temperature,
                              block_m=self.block_m, block_b=self.block_b)


# ----------------------------------------------------------------------------- pure-JAX reference
def reference_loss(q, labels, memory, memory_labels, temperature, eps=1e-8):
    """Pure-JAX port of the PyTorch forward, for verification."""
    qn = q / jnp.maximum(jnp.sqrt(jnp.sum(q * q, -1, keepdims=True)), eps)
    mn = memory / jnp.maximum(jnp.sqrt(jnp.sum(memory * memory, -1, keepdims=True)), eps)
    mem_logits = (qn @ mn.T) / temperature
    mem_targets = (labels[:, None] == memory_labels[None, :]).astype(jnp.float32)
    src_contrast = (qn @ qn.T) / temperature
    src_logits = src_contrast - jnp.max(src_contrast, axis=1, keepdims=True)
    mask = 1.0 - jnp.eye(q.shape[0], dtype=jnp.float32)
    src_targets = (labels[:, None] == labels[None, :]).astype(jnp.float32) * mask
    denom = (jnp.exp(src_logits) * mask).sum(1, keepdims=True) + jnp.exp(mem_logits).sum(1, keepdims=True)
    log_denom = jnp.log(denom)
    num = (src_targets * (src_logits - log_denom)).sum(1) + (mem_targets * (mem_logits - log_denom)).sum(1)
    den = src_targets.sum(1) + mem_targets.sum(1)
    return -jnp.mean(num / den)


if __name__ == "__main__":
    # Small but TPU-friendly shapes; chosen to exercise B-tiling (2 tiles),
    # M-streaming (2 tiles) and the padded-tail masking path (384 -> 512).
    B, D = 16, 128
    M_PRO, M_FIN = 384, 256
    temperature = 0.07

    key = jax.random.PRNGKey(0)
    k_q, k_pro, k_fin = jax.random.split(key, 3)
    q = jax.random.normal(k_q, (B, D), dtype=jnp.float32)
    pro_memory = jax.random.normal(k_pro, (M_PRO, D), dtype=jnp.float32)
    fin_memory = jax.random.normal(k_fin, (M_FIN, D), dtype=jnp.float32)
    labels = (jnp.arange(B) % 3).astype(jnp.int32)
    pro_labels = (jnp.arange(M_PRO) % 3).astype(jnp.int32)
    fin_labels = (jnp.arange(M_FIN) % 3).astype(jnp.int32)

    moco = CrossMoCoJax(fin_memory, fin_labels, pro_memory, pro_labels, temperature,
                        block_m=256, block_b=8)

    loss_pro = jax.block_until_ready(moco.forward(q, labels, adapt_to="prototype"))
    loss_fin = jax.block_until_ready(moco.forward(q, labels, adapt_to="finance"))

    ref_pro = reference_loss(q, labels, pro_memory, pro_labels, temperature)
    ref_fin = reference_loss(q, labels, fin_memory, fin_labels, temperature)

    assert jnp.isfinite(loss_pro) and jnp.isfinite(loss_fin), "loss is not finite"
    assert jnp.allclose(loss_pro, ref_pro, rtol=1e-3, atol=1e-3), (loss_pro, ref_pro)
    assert jnp.allclose(loss_fin, ref_fin, rtol=1e-3, atol=1e-3), (loss_fin, ref_fin)

    print("KERNEL_OK")
</pallas_src>

<mosaic_0001>
module attributes {stable_mosaic.version = 11 : i64} {
  func.func @kernel(%arg0: i32, %arg1: memref<16x128xf32, #tpu.memory_space<vmem>>, %arg2: memref<16x128xf32, #tpu.memory_space<vmem>>) attributes {dimension_semantics = [#tpu.dimension_semantics<parallel>], iteration_bounds = array<i64: 1>, scalar_prefetch = 0 : i64, scratch_operands = 0 : i64, tpu.core_type = #tpu.core_type<tc>, window_params = [{transform_indices = @transform_0, window_bounds = array<i64: 16, 128>}, {transform_indices = @transform_1, window_bounds = array<i64: 16, 128>}]} {
    %c0 = arith.constant 0 : index
    %c0_0 = arith.constant 0 : index
    %0 = vector.load %arg1[%c0, %c0_0] : memref<16x128xf32, #tpu.memory_space<vmem>>, vector<16x128xf32>
    %1 = arith.mulf %0, %0 : vector<16x128xf32>
    %cst = arith.constant dense<0.000000e+00> : vector<16xf32>
    %2 = vector.multi_reduction <add>, %1, %cst [1] : vector<16x128xf32> to vector<16xf32>
    %3 = vector.shape_cast %2 : vector<16xf32> to vector<16x1xf32>
    %cst_1 = arith.constant 1.000000e-16 : f32
    %4 = vector.broadcast %cst_1 : f32 to vector<16x1xf32>
    %5 = arith.maximumf %3, %4 : vector<16x1xf32>
    %6 = math.rsqrt %5 : vector<16x1xf32>
    %7 = vector.broadcast %6 : vector<16x1xf32> to vector<16x128xf32>
    %8 = arith.mulf %0, %7 : vector<16x128xf32>
    %c0_2 = arith.constant 0 : index
    %c0_3 = arith.constant 0 : index
    %9 = vector.load %arg2[%c0_2, %c0_3] : memref<16x128xf32, #tpu.memory_space<vmem>>, vector<16x128xf32>
    tpu.vector_store %arg2[%c0_2, %c0_3], %8 {strides = array<i32>} : memref<16x128xf32, #tpu.memory_space<vmem>>, vector<16x128xf32>,
    return
  }
  func.func @transform_0(%arg0: i32) -> (i32, i32) {
    %c0_i32 = arith.constant 0 : i32
    %c0_i32_0 = arith.constant 0 : i32
    return %arg0, %c0_i32 : i32, i32
  }
  func.func @transform_1(%arg0: i32) -> (i32, i32) {
    %c0_i32 = arith.constant 0 : i32
    %c0_i32_0 = arith.constant 0 : i32
    return %arg0, %c0_i32 : i32, i32
  }
}

</mosaic_0001>

<bundles_post_ra>
// kernel: tpu_custom_call.1
= control target key start
LH: loop header
LB: loop body
LE: loop exit
PB: predicated region body
PF: predicated region fallthrough
CT: control target
= control target key end

     0   :  { %6 = vsyncpa [#allocation3], 0  ;;  %s164_s0 = inlined_call_operand.hbm [shape: f32[16,128], index: 0, kind: input, shape index: {}]   ;;  %s165_s1 = inlined_call_operand.hbm [shape: f32[16,128], index: 1, kind: output, shape index: {}]  }
   0x1   :  { %7 = vsyncpa [#allocation4], 0  ;;  %s12_s8 = sshll.u32 %s164_s0, 4  ;;  %s138_s9 = smov [#allocation2]   ;;  %s13_s8 = int_to_ptr.hbm [resolvable:$true] %s12_s8 }
   0x2   :  { %s14_s10 = sshll.u32 %s138_s9, 4  ;;  %s139_s11 = smov 128   ;;  %s15_s10 = int_to_ptr.vmem [resolvable:$true] %s14_s10 }
   0x3   :  { %s140_s12 = smov 8  }
   0x4   :  { %20 = dma.hbm_to_vmem [thread:$0]  %s13_s8, 256, %s15_s10, [#allocation3], %s139_s11, %s139_s11, %s140_s12  }
   0x5   :  { %134 = dma.done.wait [#allocation3], 256  }
   0x6   :  { %135 = vsyncadd [#allocation3], 4294967040  ;;  %v25_v0 = vld [vmem:[#allocation2] sm:$0xff]  ;;  %v26_v2 = vld [vmem:[#allocation2 + $0x8] sm:$0xff]  ;;  %s141_s0 = smov [#allocation5]   ;;  %s65_s16 = sshll.u32 %s165_s1, 4  ;;  %s66_s16 = int_to_ptr.hbm [resolvable:$true] %s65_s16 }
   0x7   :  { %v27_v1 = vmul.f32 %v25_v0, %v25_v0  ;;  %v28_v3 = vmul.f32 %v26_v2, %v26_v2  ;;  %s63_s13 = sshll.u32 %s141_s0, 4  ;;  %s64_s13 = int_to_ptr.vmem [resolvable:$true] %s63_s13 }
   0x9   :  { %29 = vadd.xlane.f32.xlu0 %v27_v1 }
  0x11   :  { %31 = vadd.xlane.f32.xlu0 %v28_v3 }
  0x7c   :  { %v30_v4 = vpop.xlane.xlu0 %29 }
  0x7d   :  { %v33_v5 = vmax.f32 %v30_v4, 1e-16 }
  0x7f   :  { %82 = vrsqrt.f32 %v33_v5  ;;  %vm41_vm1 = vweird.f32 %v33_v5 }
  0x84   :  { %v32_v6 = vpop.xlane.xlu0 %31 }
  0x85   :  { %v83_v7 = vpop.eup %82  ;;  %v34_v8 = vmax.f32 %v32_v6, 1e-16 }
  0x86   :  { %v36_v9 = vmul.f32 %v83_v7, %v33_v5  ;;  %vm42_vm0 = vweird.f32 %v83_v7 }
  0x87   :  { %84 = vrsqrt.f32 %v34_v8  ;;  %vm43_vm2 = vmor %vm41_vm1, %vm42_vm0  ;;  %vm51_vm4 = vweird.f32 %v34_v8 }
  0x88   :  { %v37_v10 = vmul.f32 %v83_v7, %v36_v9 }
  0x8a   :  { %v38_v11 = vmul.f32 0.5, %v37_v10 }
  0x8c   :  { %v39_v12 = vsub.f32 1.5, %v38_v11 }
  0x8d   :  { %v85_v13 = vpop.eup %84 }
  0x8e   :  { %v40_v14 = vmul.f32 %v83_v7, %v39_v12  ;;  %v46_v15 = vmul.f32 %v85_v13, %v34_v8  ;;  %vm52_vm3 = vweird.f32 %v85_v13 }
  0x8f   :  { %vm53_vm5 = vmor %vm51_vm4, %vm52_vm3 }
  0x90   :  { %v44_v16 = vsel %vm43_vm2, %v83_v7, %v40_v14  ;;  %v47_v17 = vmul.f32 %v85_v13, %v46_v15 }
  0x91   :  { %v55_v18 = vmul.f32 %v44_v16, %v25_v0 }
  0x92   :  { %v48_v19 = vmul.f32 0.5, %v47_v17 }
  0x93   :  { %57 = vst [vmem:[#allocation5] sm:$0xff] %v55_v18 }
  0x94   :  { %v49_v20 = vsub.f32 1.5, %v48_v19 }
  0x96   :  { %v50_v21 = vmul.f32 %v85_v13, %v49_v20 }
  0x98   :  { %v54_v22 = vsel %vm53_vm5, %v85_v13, %v50_v21 }
  0x99   :  { %v56_v23 = vmul.f32 %v54_v22, %v26_v2 }
  0x9b   :  { %58 = vst [vmem:[#allocation5 + $0x8] sm:$0xff] %v56_v23 }
  0x9c   :  { %71 = dma.vmem_to_hbm [thread:$0]  %s64_s13, 256, %s66_s16, [#allocation4], %s139_s11, %s139_s11, %s140_s12  }
  0x9d   :  { %136 = dma.done.wait [#allocation4], 256  }
  0x9e   :  { %137 = vsyncadd [#allocation4], 4294967040 }
  0x9f   :  { %76 = vsyncpa [#allocation3], 1 }
  0xa0   :  { %77 = vsyncpa [#allocation4], 1 }

</bundles_post_ra>
